<compile_context>
chip_gen: v7x
topology: tpu7x:2x2x1
jax: 0.10.0
libtpu: 0.0.40
codegen_flags: <defaults>
</compile_context>

<pallas_src>
import functools

import jax
import jax.numpy as jnp
from jax.experimental import pallas as pl
from jax.experimental.pallas import tpu as pltpu


# ---------------------------------------------------------------------------
# Pallas kernel
# ---------------------------------------------------------------------------

def _tv_loss_kernel(x_ref, o_ref, *, w, gamma, inv_numel):
    # x_ref: (rows_tile, H*W) f32 in VMEM (lane-dense flattened spatial axis).
    # o_ref: (1, 1) f32 accumulator, resident across the whole grid.
    step = pl.program_id(0)

    @pl.when(step == 0)
    def _():
        o_ref[...] = jnp.zeros_like(o_ref)

    x = x_ref[...]
    # Flattened spatial index p = i*W + j for every lane.
    lane = jax.lax.broadcasted_iota(jnp.int32, x.shape, 1)

    # Horizontal neighbours: x[..., i, j] - x[..., i, j-1]; invalid at j == 0.
    dw = x - pltpu.roll(x, shift=1, axis=1)
    # Vertical neighbours: x[..., i, :] - x[..., i-1, :]  == shift of W lanes;
    # invalid on the first image row (p < W).
    dh = x - pltpu.roll(x, shift=w, axis=1)

    sq = jnp.where(lane % w != 0, dw * dw, 0.0) + jnp.where(lane >= w, dh * dh, 0.0)
    o_ref[...] += jnp.sum(sq)

    @pl.when(step == pl.num_programs(0) - 1)
    def _():
        tv = o_ref[...]                                   # (1, 1) f32
        if gamma != 2:
            # torch.pow(tv_h + tv_w, gamma / 2) via exp/log (EUP slot).
            tv = jnp.exp((gamma * 0.5) * jnp.log(tv))
        o_ref[...] = tv * inv_numel                       # / (b*c*h*w)


# ---------------------------------------------------------------------------
# Wrapper
# ---------------------------------------------------------------------------

def tv_loss_pallas(x, gamma=2):
    b, c, h, w = x.shape
    rows, hw = b * c, h * w
    x_flat = x.reshape(rows, hw).astype(jnp.float32)

    # Row tile: whole array if it comfortably fits VMEM, otherwise a multiple
    # of 8 sublanes that divides `rows` evenly (keeps blocks (8,128)-aligned).
    # TODO(synk): tiling along H*W would need halo handling for the vertical
    # (shift-by-W) differences; row tiling is sufficient here.
    tile_rows = rows
    if rows * hw * 4 > 8 * 1024 * 1024:
        for cand in (1024, 512, 256, 128, 64, 32, 16, 8):
            if rows % cand == 0:
                tile_rows = cand
                break
    grid = (rows // tile_rows,)

    kernel = functools.partial(
        _tv_loss_kernel,
        w=w,
        gamma=float(gamma),
        inv_numel=1.0 / float(b * c * h * w),
    )

    out = pl.pallas_call(
        kernel,
        out_shape=jax.ShapeDtypeStruct((1, 1), jnp.float32),
        grid=grid,
        in_specs=[pl.BlockSpec((tile_rows, hw), lambda i: (i, 0))],
        out_specs=pl.BlockSpec((1, 1), lambda i: (0, 0)),
        compiler_params=pltpu.CompilerParams(
            # reduction axis: the (1,1) output block stays resident and is
            # accumulated across the grid, so it must be "arbitrary".
            dimension_semantics=("arbitrary",)),
    )(x_flat)
    return out[0, 0]


class TVLossPallas:
    """JAX/Pallas counterpart of the PyTorch TVLoss module (forward only)."""

    def __init__(self, option_criterion: dict) -> None:
        self.gamma = option_criterion.get('gamma', 2)

    def __call__(self, x):
        return tv_loss_pallas(x, gamma=self.gamma)


# ---------------------------------------------------------------------------
# Pure-JAX reference (numerical check)
# ---------------------------------------------------------------------------

def _tv_loss_ref(x, gamma=2):
    b, c, h, w = x.shape
    tv_h = jnp.sum((x[:, :, 1:, :] - x[:, :, :-1, :]) ** 2)
    tv_w = jnp.sum((x[:, :, :, 1:] - x[:, :, :, :-1]) ** 2)
    tv = tv_h + tv_w
    if gamma != 2:
        tv = tv ** (gamma / 2.0)
    return tv / (b * c * h * w)


# ---------------------------------------------------------------------------
# main
# ---------------------------------------------------------------------------

if __name__ == "__main__":
    key = jax.random.PRNGKey(0)
    x = jax.random.uniform(key, (2, 4, 16, 16), jnp.float32)

    # Default gamma (= 2) path.
    module = TVLossPallas({})
    loss = jax.block_until_ready(module(x))
    ref = jax.block_until_ready(_tv_loss_ref(x, gamma=2))
    assert abs(float(loss) - float(ref)) <= 1e-5 * max(1.0, abs(float(ref))), \
        f"gamma=2 mismatch: pallas={float(loss)} ref={float(ref)}"

    # gamma != 2 path (pow epilogue, exp/log vs XLA pow -> slightly looser tol).
    module3 = TVLossPallas({'gamma': 3})
    loss3 = jax.block_until_ready(module3(x))
    ref3 = jax.block_until_ready(_tv_loss_ref(x, gamma=3))
    assert abs(float(loss3) - float(ref3)) <= 1e-4 * max(1.0, abs(float(ref3))), \
        f"gamma=3 mismatch: pallas={float(loss3)} ref={float(ref3)}"

    print("KERNEL_OK")
</pallas_src>

<mosaic_0001>
module attributes {stable_mosaic.version = 11 : i64} {
  func.func @_tv_loss_kernel(%arg0: i32, %arg1: memref<8x256xf32, #tpu.memory_space<vmem>>, %arg2: memref<1x1xf32, #tpu.memory_space<vmem>>) attributes {dimension_semantics = [#tpu.dimension_semantics<arbitrary>], iteration_bounds = array<i64: 1>, scalar_prefetch = 0 : i64, scratch_operands = 0 : i64, tpu.core_type = #tpu.core_type<tc>, window_params = [{transform_indices = @transform_0, window_bounds = array<i64: 8, 256>}, {pipeline_mode = #tpu.pipeline_mode<synchronous>, transform_indices = @transform_1, window_bounds = array<i64: 1, 1>}]} {
    %c0_i32 = arith.constant 0 : i32
    %0 = arith.cmpi eq, %arg0, %c0_i32 : i32
    %1 = arith.extui %0 : i1 to i32
    %c0_i32_0 = arith.constant 0 : i32
    %2 = arith.cmpi ne, %1, %c0_i32_0 : i32
    scf.if %2 {
      %cst_18 = arith.constant 0.000000e+00 : f32
      %47 = vector.broadcast %cst_18 : f32 to vector<1x1xf32>
      %c0_19 = arith.constant 0 : index
      %c0_20 = arith.constant 0 : index
      %48 = vector.load %arg2[%c0_19, %c0_20] : memref<1x1xf32, #tpu.memory_space<vmem>>, vector<1x1xf32>
      tpu.vector_store %arg2[%c0_19, %c0_20], %47 {strides = array<i32>} : memref<1x1xf32, #tpu.memory_space<vmem>>, vector<1x1xf32>,
    } else {
    }
    %c0 = arith.constant 0 : index
    %c0_1 = arith.constant 0 : index
    %3 = vector.load %arg1[%c0, %c0_1] : memref<8x256xf32, #tpu.memory_space<vmem>>, vector<8x256xf32>
    %4 = tpu.iota {dimensions = array<i32: 1>} : vector<8x256xi32>
    %c1_i32 = arith.constant 1 : i32
    %5 = tpu.dynamic_rotate %3 by %c1_i32 dim 1 : vector<8x256xf32>, i32 -> vector<8x256xf32>
    %6 = arith.subf %3, %5 : vector<8x256xf32>
    %c16_i32 = arith.constant 16 : i32
    %7 = tpu.dynamic_rotate %3 by %c16_i32 dim 1 : vector<8x256xf32>, i32 -> vector<8x256xf32>
    %8 = arith.subf %3, %7 : vector<8x256xf32>
    %c16_i32_2 = arith.constant 16 : i32
    %c0_i32_3 = arith.constant 0 : i32
    %9 = arith.cmpi eq, %c16_i32_2, %c0_i32_3 : i32
    %c1_i32_4 = arith.constant 1 : i32
    %10 = arith.select %9, %c1_i32_4, %c16_i32_2 : i32
    %11 = vector.broadcast %10 : i32 to vector<8x256xi32>
    %12 = arith.remsi %4, %11 : vector<8x256xi32>
    %c0_i32_5 = arith.constant 0 : i32
    %13 = vector.broadcast %c0_i32_5 : i32 to vector<8x256xi32>
    %14 = arith.cmpi ne, %12, %13 : vector<8x256xi32>
    %c0_i32_6 = arith.constant 0 : i32
    %15 = vector.broadcast %c0_i32_6 : i32 to vector<8x256xi32>
    %16 = arith.cmpi slt, %12, %15 : vector<8x256xi32>
    %c0_i32_7 = arith.constant 0 : i32
    %17 = arith.cmpi slt, %10, %c0_i32_7 : i32
    %18 = vector.broadcast %17 : i1 to vector<8x256xi1>
    %19 = vector.broadcast %18 : vector<8x256xi1> to vector<8x256xi1>
    %20 = arith.xori %16, %19 : vector<8x256xi1>
    %21 = arith.andi %20, %14 : vector<8x256xi1>
    %22 = vector.broadcast %10 : i32 to vector<8x256xi32>
    %23 = arith.addi %12, %22 : vector<8x256xi32>
    %24 = arith.select %21, %23, %12 : vector<8x256xi1>, vector<8x256xi32>
    %c0_i32_8 = arith.constant 0 : i32
    %25 = vector.broadcast %c0_i32_8 : i32 to vector<8x256xi32>
    %26 = arith.cmpi ne, %24, %25 : vector<8x256xi32>
    %27 = arith.mulf %6, %6 : vector<8x256xf32>
    %cst = arith.constant 0.000000e+00 : f32
    %28 = vector.broadcast %cst : f32 to vector<8x256xf32>
    %29 = arith.select %26, %27, %28 : vector<8x256xi1>, vector<8x256xf32>
    %c16_i32_9 = arith.constant 16 : i32
    %30 = vector.broadcast %c16_i32_9 : i32 to vector<8x256xi32>
    %31 = arith.cmpi sge, %4, %30 : vector<8x256xi32>
    %32 = arith.mulf %8, %8 : vector<8x256xf32>
    %cst_10 = arith.constant 0.000000e+00 : f32
    %33 = vector.broadcast %cst_10 : f32 to vector<8x256xf32>
    %34 = arith.select %31, %32, %33 : vector<8x256xi1>, vector<8x256xf32>
    %35 = arith.addf %29, %34 : vector<8x256xf32>
    %c0_11 = arith.constant 0 : index
    %c0_12 = arith.constant 0 : index
    %36 = vector.load %arg2[%c0_11, %c0_12] : memref<1x1xf32, #tpu.memory_space<vmem>>, vector<1x1xf32>
    %37 = vector.shape_cast %35 : vector<8x256xf32> to vector<1x8x256xf32>
    %cst_13 = arith.constant dense<0.000000e+00> : vector<1xf32>
    %38 = vector.multi_reduction <add>, %37, %cst_13 [1, 2] : vector<1x8x256xf32> to vector<1xf32>
    %39 = vector.shape_cast %38 : vector<1xf32> to vector<1x1x1xf32>
    %40 = vector.extract %39[0, 0, 0] : f32 from vector<1x1x1xf32>
    %41 = vector.broadcast %40 : f32 to vector<1x1xf32>
    %42 = arith.addf %36, %41 : vector<1x1xf32>
    %c0_14 = arith.constant 0 : index
    %c0_15 = arith.constant 0 : index
    %43 = vector.load %arg2[%c0_14, %c0_15] : memref<1x1xf32, #tpu.memory_space<vmem>>, vector<1x1xf32>
    tpu.vector_store %arg2[%c0_14, %c0_15], %42 {strides = array<i32>} : memref<1x1xf32, #tpu.memory_space<vmem>>, vector<1x1xf32>,
    %c0_i32_16 = arith.constant 0 : i32
    %44 = arith.cmpi eq, %arg0, %c0_i32_16 : i32
    %45 = arith.extui %44 : i1 to i32
    %c0_i32_17 = arith.constant 0 : i32
    %46 = arith.cmpi ne, %45, %c0_i32_17 : i32
    scf.if %46 {
      %c0_18 = arith.constant 0 : index
      %c0_19 = arith.constant 0 : index
      %47 = vector.load %arg2[%c0_18, %c0_19] : memref<1x1xf32, #tpu.memory_space<vmem>>, vector<1x1xf32>
      %cst_20 = arith.constant 4.8828125E-4 : f32
      %48 = vector.broadcast %cst_20 : f32 to vector<1x1xf32>
      %49 = arith.mulf %47, %48 : vector<1x1xf32>
      %c0_21 = arith.constant 0 : index
      %c0_22 = arith.constant 0 : index
      %50 = vector.load %arg2[%c0_21, %c0_22] : memref<1x1xf32, #tpu.memory_space<vmem>>, vector<1x1xf32>
      tpu.vector_store %arg2[%c0_21, %c0_22], %49 {strides = array<i32>} : memref<1x1xf32, #tpu.memory_space<vmem>>, vector<1x1xf32>,
    } else {
    }
    return
  }
  func.func @transform_0(%arg0: i32) -> (i32, i32) {
    %c0_i32 = arith.constant 0 : i32
    %c0_i32_0 = arith.constant 0 : i32
    return %arg0, %c0_i32 : i32, i32
  }
  func.func @transform_1(%arg0: i32) -> (i32, i32) {
    %c0_i32 = arith.constant 0 : i32
    %c0_i32_0 = arith.constant 0 : i32
    %c0_i32_1 = arith.constant 0 : i32
    return %c0_i32, %c0_i32_0 : i32, i32
  }
}

</mosaic_0001>

<bundles_post_ra>
// kernel: tpu_custom_call.1
= control target key start
LH: loop header
LB: loop body
LE: loop exit
PB: predicated region body
PF: predicated region fallthrough
CT: control target
= control target key end

     0   :  { %6 = vsyncpa [#allocation3], 0  ;;  %s221_s0 = inlined_call_operand.hbm [shape: f32[8,256], index: 0, kind: input, shape index: {}]   ;;  %s222_s1 = inlined_call_operand.hbm [shape: f32[1,1], index: 1, kind: output, shape index: {}]  }
   0x1   :  { %7 = vsyncpa [#allocation4], 0  ;;  %s179_s6 = smov [#allocation2]   ;;  %s131_s10 = scalar_lea.hbm %s221_s0, 256 }
   0x2   :  { %s14_s7 = sshll.u32 %s179_s6, 4  ;;  %p132_p0 = scmp.ne.s32.totalorder %s221_s0, %s131_s10  ;;  %s15_s7 = int_to_ptr.vmem [resolvable:$true] %s14_s7 }
   0x3   :  { %p135_p1 = scmp.lt.u32.totalorder %s131_s10, %s221_s0 }
   0x5   :  { %p137_p2 = pnand %p135_p1, %p132_p0 }
   0x7   :  { %140 = shalt.err (!%p137_p2)
}
   0x8   :  { %s141_s15 = scalar_lea.vmem %s15_s7, 256  ;;  %p146_p4 = scmp.lt.s32.totalorder %s15_s7, %s15_s7 }
   0x9   :  { %p142_p3 = scmp.ne.s32.totalorder %s15_s7, %s141_s15  ;;  %p147_p5 = scmp.lt.s32.totalorder %s141_s15, %s141_s15 }
   0xb   :  { %p148_p6 = por %p147_p5, %p146_p4 }
   0xd   :  { %p149_p7 = pnand %p148_p6, %p142_p3 }
   0xf   :  { %152 = shalt.err (!%p149_p7)
}
  0x10   :  { %17 = dma.hbm_to_vmem [thread:$0]  %s221_s0, 256, %s15_s7, [#allocation3]  }
  0x11   :  { %175 = dma.done.wait [#allocation3], 256  }
  0x12   :  { %176 = vsyncadd [#allocation3], 4294967040  ;;  %v27_v0 = vld [vmem:[#allocation2] sm:$0xff]  ;;  %s180_s18 = smov 16   ;;  %s181_s19 = smov 1   ;;  %v28_v1 = vld [vmem:[#allocation2 + $0x8] sm:$0xff]  ;;  %v29_v2 = vlaneseq }
  0x13   :  { %41 = vrot.lane.b32.xlu1 %v27_v0, %s180_s18  ;;  %32 = vrot.lane.b32.xlu0 %v27_v0, %s181_s19  ;;  %vm25_vm5 = vcmask 0   ;;  %v182_v29 = vmov 0.0   ;;  %s183_s20 = smov [#allocation5]  }
  0x14   :  { %v30_v3 = vand.u32 127, %v29_v2  ;;  %26 = vst.msk [vmem:[#allocation5] sm:$0x1] %vm25_vm5, %v182_v29  ;;  %s115_s21 = sshll.u32 %s183_s20, 4  ;;  %s116_s21 = int_to_ptr.vmem [resolvable:$true] %s115_s21 }
  0x15   :  { %s153_s22 = scalar_lea.vmem %s116_s21, 16  ;;  %s157_s23 = scalar_lea.vmem %s116_s21, 32 }
  0x16   :  { %v31_v4 = vadd.s32 128, %v30_v3  ;;  %vm45_vm0 = vcmp.lt.s32.totalorder %v30_v3, 16  ;;  %vm36_vm1 = vcmp.lt.s32.totalorder %v30_v3, 1  ;;  %v54_v7 = vand.u32 15, %v30_v3  ;;  %p154_p8 = scmp.ne.s32.totalorder %s116_s21, %s153_s22  ;;  %p158_p9 = scmp.lt.s32.totalorder %s116_s21, %s116_s21 }
  0x17   :  { %43 = vrot.lane.b32.xlu1 %v28_v1, %s180_s18  ;;  %34 = vrot.lane.b32.xlu0 %v28_v1, %s181_s19  ;;  %vm80_vm4 = vcmp.ge.s32.totalorder %v30_v3, 16  ;;  %p159_p10 = scmp.lt.s32.totalorder %s157_s23, %s153_s22 }
  0x18   :  { %v61_v8 = vand.u32 15, %v31_v4  ;;  %vm74_vm2 = vcmp.ne.s32.totalorder %v54_v7, 0 }
  0x19   :  { %p160_p11 = por %p159_p10, %p158_p9 }
  0x1a   :  { %vm75_vm3 = vcmp.ne.s32.totalorder %v61_v8, 0 }
  0x1b   :  { %v88_v37 = vld [vmem:[#allocation5] sm:$0x1]  ;;  %p161_p12 = pnand %p160_p11, %p154_p8 }
  0x85   :  { %v42_v5 = vpop.permute.xlu1 %41  ;;  %v33_v6 = vpop.permute.xlu0 %32 }
  0x89   :  { %v44_v9 = vpop.permute.xlu1 %43  ;;  %v35_v10 = vpop.permute.xlu0 %34 }
  0x8a   :  { %v46_v11 = vsel %vm45_vm0, %v42_v5, %v44_v9  ;;  %v47_v12 = vsel %vm45_vm0, %v44_v9, %v42_v5  ;;  %v37_v13 = vsel %vm36_vm1, %v33_v6, %v35_v10  ;;  %v38_v14 = vsel %vm36_vm1, %v35_v10, %v33_v6 }
  0x8b   :  { %v48_v15 = vsub.f32 %v27_v0, %v47_v12  ;;  %v49_v16 = vsub.f32 %v28_v1, %v46_v11  ;;  %v39_v17 = vsub.f32 %v27_v0, %v38_v14  ;;  %v40_v18 = vsub.f32 %v28_v1, %v37_v13 }
  0x8d   :  { %v82_v19 = vmul.f32 %v48_v15, %v48_v15  ;;  %v83_v20 = vmul.f32 %v49_v16, %v49_v16  ;;  %v76_v21 = vmul.f32 %v39_v17, %v39_v17  ;;  %v77_v22 = vmul.f32 %v40_v18, %v40_v18 }
  0x8f   :  { %v78_v23 = vsel %vm74_vm2, %v76_v21, 0.0  ;;  %v79_v24 = vsel %vm75_vm3, %v77_v22, 0.0  ;;  %v84_v25 = vsel %vm80_vm4, %v82_v19, 0.0 }
  0x90   :  { %v86_v26 = vadd.f32 %v84_v25, %v78_v23  ;;  %v87_v27 = vadd.f32 %v83_v20, %v79_v24 }
  0x92   :  { %v89_v28 = vadd.f32 %v87_v27, %v86_v26 }
  0x94   :  { %90 = vadd.xlane.f32.xlu0 %v89_v28 }
 0x121   :  { %v91_v30 = vpop.xlane.xlu0 %90 }
 0x122   :  { %v92_v31 = vrot.slane %v91_v30, 4 }
 0x124   :  { %v93_v32 = vadd.f32 %v92_v31, %v91_v30 }
 0x126   :  { %v94_v33 = vrot.slane %v93_v32, 2 }
 0x128   :  { %v95_v34 = vadd.f32 %v94_v33, %v93_v32 }
 0x12a   :  { %v96_v35 = vrot.slane %v95_v34, 1 }
 0x12c   :  { %v97_v36 = vadd.f32 %v96_v35, %v95_v34 }
 0x12e   :  { %124 = vpush %v97_v36 }
 0x15f   :  { %s125_s0 = spop %124 }
 0x160   :  { %v99_v38 = vstv %s125_s0 }
 0x161   :  { %v100_v39 = vadd.f32 %v99_v38, %v88_v37 }
 0x163   :  { %102 = vst.msk [vmem:[#allocation5] sm:$0x1] %vm25_vm5, %v100_v39 }
 0x16a   :  { %v106_v40 = vld [vmem:[#allocation5] sm:$0x1] }
 0x16b   :  { %v107_v41 = vmul.f32 0.00048828125, %v106_v40 }
 0x16d   :  { %108 = vst.msk [vmem:[#allocation5] sm:$0x1] %vm25_vm5, %v107_v41 }
 0x16e   :  { %164 = shalt.err (!%p161_p12)
}
 0x16f   :  { %s165_s26 = scalar_lea.hbm %s222_s1, 16 }
 0x170   :  { %p166_p13 = scmp.ne.s32.totalorder %s222_s1, %s165_s26  ;;  %p169_p0 = scmp.lt.u32.totalorder %s165_s26, %s222_s1 }
 0x172   :  { %p171_p1 = pnand %p169_p0, %p166_p13 }
 0x174   :  { %174 = shalt.err (!%p171_p1)
}
 0x175   :  { %118 = dma.vmem_to_hbm [thread:$0]  %s116_s21, 16, %s222_s1, [#allocation4]  }
 0x176   :  { %177 = dma.done.wait [#allocation4], 16  }
 0x177   :  { %178 = vsyncadd [#allocation4], 4294967280 }
 0x178   :  { %122 = vsyncpa [#allocation3], 1 }
 0x179   :  { %123 = vsyncpa [#allocation4], 1 }

</bundles_post_ra>
